<compile_context>
chip_gen: v6e
topology: v6e:2x2x1
jax: 0.10.0
libtpu: 0.0.40
codegen_flags: <defaults>
</compile_context>

<pallas_src>
import functools

import jax
import jax.numpy as jnp
from jax.experimental import pallas as pl
from jax.experimental.pallas import tpu as pltpu

F32_MIN = float(jnp.finfo(jnp.float32).min)


def _round_up(n, m):
    return ((n + m - 1) // m) * m


def _head_kernel(x_ref, w_ref, b_ref, out_ref, *, sp_lo, sp_hi, compute_dtype):
    """Fused head: one matmul, one lane-dense 128-wide output slab.

    Column layout of the slab:
      [0, 3)           category logits (linear)
      [3, 3 + 2P)      softplus(beta params)         -> [sp_lo, sp_hi)
      [3 + 2P, 3 + 3P) beta mixture logits (linear)
      [3 + 3P, 128)    zero padding (sliced off in the wrapper)
    """
    # In-kernel cast (storage dtype -> compute dtype); no wrapper materialization.
    x = x_ref[...].astype(compute_dtype)                      # (tile, H)
    y = jnp.dot(x, w_ref[...], preferred_element_type=jnp.float32)
    y = y + b_ref[...]                                        # f32 bias broadcast (1, Wout)

    # Numerically stable softplus in f32 (v5e has no bf16 VPU/EUP),
    # applied only to the beta-parameter columns via a constant column mask.
    sp = jnp.maximum(y, 0.0) + jnp.log1p(jnp.exp(-jnp.abs(y)))
    col = jax.lax.broadcasted_iota(jnp.int32, y.shape, 1)
    is_beta_param = (col >= sp_lo) & (col < sp_hi)
    out_ref[...] = jnp.where(is_beta_param, sp, y).astype(out_ref.dtype)


def mixed_distribution_head_forward(x, params, action_mask=None, *,
                                    tile_n=2048, compute_dtype=jnp.bfloat16):
    """x: (B, T, H). Returns (category_logits, alphas, betas, beta_logits), f32."""
    B, T, H = x.shape
    N = B * T
    P = params["beta_weight_w"].shape[1]
    w_logical = 3 + 3 * P
    w_out = _round_up(max(w_logical, 128), 128)               # keep 128: lane-dense, HBM-bound

    cdt = jnp.dtype(compute_dtype)
    out_dtype = cdt if cdt == jnp.dtype(jnp.bfloat16) else jnp.dtype(jnp.float32)
    x_itemsize = jnp.dtype(x.dtype).itemsize                  # x stays in storage dtype
    w_itemsize = cdt.itemsize
    out_itemsize = out_dtype.itemsize

    # ---- fuse the three heads into one weight / bias (padded to 128 lanes) ----
    w_fused = jnp.concatenate(
        [params["category_w"], params["beta_w"], params["beta_weight_w"]], axis=1)
    w_fused = jnp.pad(w_fused, ((0, 0), (0, w_out - w_logical))).astype(cdt)
    b_fused = jnp.concatenate(
        [params["category_b"], params["beta_b"], params["beta_weight_b"]], axis=1)
    b_fused = jnp.pad(b_fused, ((0, 0), (0, w_out - w_logical))).astype(jnp.float32)

    # ---- row tile from the per-generation VMEM budget --------------------------
    try:
        vmem_cap = int(pltpu.get_tpu_info().vmem_capacity_bytes)   # 64 MiB/TC on v7x, 128 MiB v5e/v6e
    except Exception:
        vmem_cap = 64 * 1024 * 1024
    vmem_budget = min((vmem_cap * 3) // 4, 96 * 1024 * 1024)       # ~48 MiB on v7x, ~96 MiB on v5e/v6e

    # Resident operands (count weight double-buffered to stay safe on the fallback path).
    resident_bytes = 2 * H * w_out * w_itemsize + 2 * w_out * 4
    # Pipelined per-row bytes: double-buffered x tile (at storage dtype) + output slab.
    per_row_bytes = 2 * H * x_itemsize + 2 * w_out * out_itemsize

    tile_vmem_max = max(8, (vmem_budget - resident_bytes) // max(per_row_bytes, 1))
    tile_parallel_max = _round_up(-(-N // 4), 8)              # >=4 grid steps for v7x's 2 TCs
    tile = min(int(tile_n), int(tile_vmem_max), tile_parallel_max)
    tile = max(8, (tile // 8) * 8)                            # (8,128) sublane alignment

    grid = (pl.cdiv(N, tile),)                                # ragged tail handled by Pallas masking
    x_flat = x.reshape(N, H)                                  # free metadata reshape; NO cast, NO pad

    vmem_needed = resident_bytes + tile * per_row_bytes
    vmem_limit = int(min(vmem_budget, max(vmem_needed + (4 << 20), 16 << 20)))

    cost = pl.CostEstimate(
        flops=2 * N * H * w_out,
        transcendentals=2 * N * w_out,                         # exp + log1p over the full slab
        bytes_accessed=(N * H * x_itemsize + H * w_out * w_itemsize
                        + w_out * 4 + N * w_out * out_itemsize),
    )

    kernel = functools.partial(_head_kernel, sp_lo=3, sp_hi=3 + 2 * P,
                               compute_dtype=cdt)

    def _call(single_buffer_resident):
        if single_buffer_resident and hasattr(pl, "Buffered"):
            # Constant index_map -> single buffer is enough; frees VMEM for bigger tiles.
            w_spec = pl.BlockSpec((H, w_out), lambda i: (0, 0),
                                  pipeline_mode=pl.Buffered(1))
            b_spec = pl.BlockSpec((1, w_out), lambda i: (0, 0),
                                  pipeline_mode=pl.Buffered(1))
        else:
            w_spec = pl.BlockSpec((H, w_out), lambda i: (0, 0))
            b_spec = pl.BlockSpec((1, w_out), lambda i: (0, 0))
        return pl.pallas_call(
            kernel,
            out_shape=jax.ShapeDtypeStruct((N, w_out), out_dtype),
            grid_spec=pltpu.PrefetchScalarGridSpec(
                num_scalar_prefetch=0,
                grid=grid,
                in_specs=[
                    pl.BlockSpec((tile, H), lambda i: (i, 0)),  # x rows (full K, storage dtype)
                    w_spec,                                     # fused weight (resident)
                    b_spec,                                     # fused bias (f32)
                ],
                out_specs=pl.BlockSpec((tile, w_out), lambda i: (i, 0)),
            ),
            compiler_params=pltpu.CompilerParams(
                dimension_semantics=("parallel",),
                vmem_limit_bytes=vmem_limit,
            ),
            cost_estimate=cost,
        )(x_flat, w_fused, b_fused)

    try:
        slab = _call(True)
    except Exception:
        # Fallback for jax versions without BlockSpec.pipeline_mode / Buffered(1).
        slab = _call(False)

    slab = slab.astype(jnp.float32)                            # tiny logical columns only matter
    cat = slab[:, :3]
    alphas = slab[:, 3:3 + P]
    betas = slab[:, 3 + P:3 + 2 * P]
    blog = slab[:, 3 + 2 * P:3 + 3 * P]

    # Categorical action mask on the tiny logits (free in XLA).
    if action_mask is not None:
        mask = action_mask.reshape(N, 3).astype(bool)
        cat = jnp.where(mask, cat, jnp.float32(F32_MIN))

    return (cat.reshape(B, T, 3),
            alphas.reshape(B, T, P),
            betas.reshape(B, T, P),
            blog.reshape(B, T, P))


def init_params(key, input_size, num_peaks=3):
    """Deterministic init mimicking torch.nn.Linear (uniform +/- 1/sqrt(in)),
    with beta_layer bias constant-initialized to 1.0 (as in the module).
    Weights stored transposed vs PyTorch: (H, out)."""
    bound = 1.0 / jnp.sqrt(jnp.float32(input_size))
    k = jax.random.split(key, 6)
    u = lambda kk, shape: jax.random.uniform(kk, shape, jnp.float32, -bound, bound)
    return {
        "category_w": u(k[0], (input_size, 3)),
        "category_b": u(k[1], (1, 3)),
        "beta_w": u(k[2], (input_size, 2 * num_peaks)),
        "beta_b": jnp.ones((1, 2 * num_peaks), jnp.float32),   # constant_(1.0)
        "beta_weight_w": u(k[3], (input_size, num_peaks)),
        "beta_weight_b": u(k[4], (1, num_peaks)),
    }


def reference_forward(x, params, action_mask=None):
    """Pure-JAX f32 reference of the PyTorch forward (for correctness check)."""
    hp = jax.lax.Precision.HIGHEST
    cat = jnp.dot(x, params["category_w"], precision=hp) + params["category_b"][0]
    if action_mask is None:
        action_mask = jnp.ones(cat.shape, dtype=bool)
    cat = jnp.where(action_mask, cat, jnp.float32(F32_MIN))
    bp = jax.nn.softplus(jnp.dot(x, params["beta_w"], precision=hp)
                         + params["beta_b"][0])
    P = params["beta_weight_w"].shape[1]
    alphas, betas = bp[..., :P], bp[..., P:]
    blog = (jnp.dot(x, params["beta_weight_w"], precision=hp)
            + params["beta_weight_b"][0])
    return cat, alphas, betas, blog


if __name__ == "__main__":
    B, T, H, P = 2, 8, 32, 3
    key = jax.random.PRNGKey(0)
    kx, km, kp = jax.random.split(key, 3)

    x = jax.random.normal(kx, (B, T, H), jnp.float32)
    # action mask: last category always allowed, others random (deterministic)
    action_mask = jax.random.bernoulli(km, 0.8, (B, T, 3)).at[..., -1].set(True)
    params = init_params(kp, H, P)

    refs = reference_forward(x, params, action_mask)

    # Default performance path: f32 x streamed as-is, cast to bf16 in-kernel,
    # bf16 output slab. Loose tolerance for bf16 rounding.
    outs = mixed_distribution_head_forward(x, params, action_mask)
    outs = jax.block_until_ready(outs)
    for o, r in zip(outs, refs):
        assert o.shape == r.shape
        assert jnp.allclose(o, r, atol=3e-2, rtol=3e-2), "bf16 path mismatch vs reference"

    # f32 compute path (f32 slab): tight correctness check of the fused-kernel structure.
    outs32 = mixed_distribution_head_forward(x, params, action_mask,
                                             compute_dtype=jnp.float32)
    outs32 = jax.block_until_ready(outs32)
    for o, r in zip(outs32, refs):
        assert o.shape == r.shape
        assert jnp.allclose(o, r, atol=1e-4, rtol=1e-4), "f32 path mismatch vs reference"

    # TODO(synk): UnifiedDistribution's sample()/log_prob()/entropy() are
    # host-side distribution utilities (stochastic sampling, logsumexp over
    # tiny mixtures) outside the module's forward hot path; not implemented
    # as Pallas kernels here.
    print("KERNEL_OK")
</pallas_src>

<mosaic_0001>
module attributes {stable_mosaic.version = 11 : i64} {
  func.func @_head_kernel(%arg0: i32, %arg1: memref<8x32xf32, #tpu.memory_space<vmem>>, %arg2: memref<32x128xbf16, #tpu.memory_space<vmem>>, %arg3: memref<1x128xf32, #tpu.memory_space<vmem>>, %arg4: memref<8x128xbf16, #tpu.memory_space<vmem>>) attributes {dimension_semantics = [#tpu.dimension_semantics<parallel>], iteration_bounds = array<i64: 2>, scalar_prefetch = 0 : i64, scratch_operands = 0 : i64, tpu.core_type = #tpu.core_type<tc>, window_params = [{transform_indices = @transform_0, window_bounds = array<i64: 8, 32>}, {pipeline_mode = #tpu.pipeline_mode<synchronous>, transform_indices = @transform_1, window_bounds = array<i64: 32, 128>}, {pipeline_mode = #tpu.pipeline_mode<synchronous>, transform_indices = @transform_2, window_bounds = array<i64: 1, 128>}, {transform_indices = @transform_3, window_bounds = array<i64: 8, 128>}]} {
    %c0 = arith.constant 0 : index
    %c0_0 = arith.constant 0 : index
    %0 = vector.load %arg1[%c0, %c0_0] : memref<8x32xf32, #tpu.memory_space<vmem>>, vector<8x32xf32>
    %1 = arith.truncf %0 : vector<8x32xf32> to vector<8x32xbf16>
    %c0_1 = arith.constant 0 : index
    %c0_2 = arith.constant 0 : index
    %2 = vector.load %arg2[%c0_1, %c0_2] : memref<32x128xbf16, #tpu.memory_space<vmem>>, vector<32x128xbf16>
    %cst = arith.constant dense<0.000000e+00> : vector<8x128xf32>
    %3 = tpu.matmul %1, %2, %cst {dimension_numbers = #tpu.dot_dimension_numbers<[1], [0], [0], [1], [0, 0, 1, 1], [], []>} : vector<8x32xbf16>, vector<32x128xbf16>, vector<8x128xf32> -> vector<8x128xf32>
    %c0_3 = arith.constant 0 : index
    %c0_4 = arith.constant 0 : index
    %4 = vector.load %arg3[%c0_3, %c0_4] : memref<1x128xf32, #tpu.memory_space<vmem>>, vector<1x128xf32>
    %5 = vector.broadcast %4 : vector<1x128xf32> to vector<8x128xf32>
    %6 = arith.addf %3, %5 : vector<8x128xf32>
    %cst_5 = arith.constant 0.000000e+00 : f32
    %7 = vector.broadcast %cst_5 : f32 to vector<8x128xf32>
    %8 = arith.maximumf %6, %7 : vector<8x128xf32>
    %9 = math.absf %6 : vector<8x128xf32>
    %cst_6 = arith.constant 0.000000e+00 : f32
    %10 = vector.broadcast %cst_6 : f32 to vector<8x128xf32>
    %11 = arith.subf %10, %9 : vector<8x128xf32>
    %12 = math.exp %11 : vector<8x128xf32>
    %13 = math.log1p %12 : vector<8x128xf32>
    %14 = arith.addf %8, %13 : vector<8x128xf32>
    %15 = tpu.iota {dimensions = array<i32: 1>} : vector<8x128xi32>
    %c3_i32 = arith.constant 3 : i32
    %16 = vector.broadcast %c3_i32 : i32 to vector<8x128xi32>
    %17 = arith.cmpi sge, %15, %16 : vector<8x128xi32>
    %c9_i32 = arith.constant 9 : i32
    %18 = vector.broadcast %c9_i32 : i32 to vector<8x128xi32>
    %19 = arith.cmpi slt, %15, %18 : vector<8x128xi32>
    %20 = arith.andi %17, %19 : vector<8x128xi1>
    %21 = arith.select %20, %14, %6 : vector<8x128xi1>, vector<8x128xf32>
    %22 = arith.truncf %21 : vector<8x128xf32> to vector<8x128xbf16>
    %c0_7 = arith.constant 0 : index
    %c0_8 = arith.constant 0 : index
    %23 = vector.load %arg4[%c0_7, %c0_8] : memref<8x128xbf16, #tpu.memory_space<vmem>>, vector<8x128xbf16>
    tpu.vector_store %arg4[%c0_7, %c0_8], %22 {strides = array<i32>} : memref<8x128xbf16, #tpu.memory_space<vmem>>, vector<8x128xbf16>,
    return
  }
  func.func @transform_0(%arg0: i32) -> (i32, i32) {
    %c0_i32 = arith.constant 0 : i32
    %c0_i32_0 = arith.constant 0 : i32
    return %arg0, %c0_i32 : i32, i32
  }
  func.func @transform_1(%arg0: i32) -> (i32, i32) {
    %c0_i32 = arith.constant 0 : i32
    %c0_i32_0 = arith.constant 0 : i32
    %c0_i32_1 = arith.constant 0 : i32
    return %c0_i32, %c0_i32_0 : i32, i32
  }
  func.func @transform_2(%arg0: i32) -> (i32, i32) {
    %c0_i32 = arith.constant 0 : i32
    %c0_i32_0 = arith.constant 0 : i32
    %c0_i32_1 = arith.constant 0 : i32
    return %c0_i32, %c0_i32_0 : i32, i32
  }
  func.func @transform_3(%arg0: i32) -> (i32, i32) {
    %c0_i32 = arith.constant 0 : i32
    %c0_i32_0 = arith.constant 0 : i32
    return %arg0, %c0_i32 : i32, i32
  }
}

module attributes {stable_mosaic.version = 11 : i64} {
  func.func @_head_kernel(%arg0: i32, %arg1: memref<8x32xf32, #tpu.memory_space<vmem>>, %arg2: memref<32x128xbf16, #tpu.memory_space<vmem>>, %arg3: memref<1x128xf32, #tpu.memory_space<vmem>>, %arg4: memref<8x128xbf16, #tpu.memory_space<vmem>>) attributes {dimension_semantics = [#tpu.dimension_semantics<parallel>], iteration_bounds = array<i64: 2>, scalar_prefetch = 0 : i64, scratch_operands = 0 : i64, tpu.core_type = #tpu.core_type<tc>, window_params = [{transform_indices = @transform_0, window_bounds = array<i64: 8, 32>}, {pipeline_mode = #tpu.pipeline_mode<synchronous>, transform_indices = @transform_1, window_bounds = array<i64: 32, 128>}, {pipeline_mode = #tpu.pipeline_mode<synchronous>, transform_indices = @transform_2, window_bounds = array<i64: 1, 128>}, {transform_indices = @transform_3, window_bounds = array<i64: 8, 128>}]} {
    %c0 = arith.constant 0 : index
    %c0_0 = arith.constant 0 : index
    %0 = vector.load %arg1[%c0, %c0_0] : memref<8x32xf32, #tpu.memory_space<vmem>>, vector<8x32xf32>
    %1 = arith.truncf %0 : vector<8x32xf32> to vector<8x32xbf16>
    %c0_1 = arith.constant 0 : index
    %c0_2 = arith.constant 0 : index
    %2 = vector.load %arg2[%c0_1, %c0_2] : memref<32x128xbf16, #tpu.memory_space<vmem>>, vector<32x128xbf16>
    %cst = arith.constant dense<0.000000e+00> : vector<8x128xf32>
    %3 = tpu.matmul %1, %2, %cst {dimension_numbers = #tpu.dot_dimension_numbers<[1], [0], [0], [1], [0, 0, 1, 1], [], []>} : vector<8x32xbf16>, vector<32x128xbf16>, vector<8x128xf32> -> vector<8x128xf32>
    %c0_3 = arith.constant 0 : index
    %c0_4 = arith.constant 0 : index
    %4 = vector.load %arg3[%c0_3, %c0_4] : memref<1x128xf32, #tpu.memory_space<vmem>>, vector<1x128xf32>
    %5 = vector.broadcast %4 : vector<1x128xf32> to vector<8x128xf32>
    %6 = arith.addf %3, %5 : vector<8x128xf32>
    %cst_5 = arith.constant 0.000000e+00 : f32
    %7 = vector.broadcast %cst_5 : f32 to vector<8x128xf32>
    %8 = arith.maximumf %6, %7 : vector<8x128xf32>
    %9 = math.absf %6 : vector<8x128xf32>
    %cst_6 = arith.constant 0.000000e+00 : f32
    %10 = vector.broadcast %cst_6 : f32 to vector<8x128xf32>
    %11 = arith.subf %10, %9 : vector<8x128xf32>
    %12 = math.exp %11 : vector<8x128xf32>
    %13 = math.log1p %12 : vector<8x128xf32>
    %14 = arith.addf %8, %13 : vector<8x128xf32>
    %15 = tpu.iota {dimensions = array<i32: 1>} : vector<8x128xi32>
    %c3_i32 = arith.constant 3 : i32
    %16 = vector.broadcast %c3_i32 : i32 to vector<8x128xi32>
    %17 = arith.cmpi sge, %15, %16 : vector<8x128xi32>
    %c9_i32 = arith.constant 9 : i32
    %18 = vector.broadcast %c9_i32 : i32 to vector<8x128xi32>
    %19 = arith.cmpi slt, %15, %18 : vector<8x128xi32>
    %20 = arith.andi %17, %19 : vector<8x128xi1>
    %21 = arith.select %20, %14, %6 : vector<8x128xi1>, vector<8x128xf32>
    %22 = arith.truncf %21 : vector<8x128xf32> to vector<8x128xbf16>
    %c0_7 = arith.constant 0 : index
    %c0_8 = arith.constant 0 : index
    %23 = vector.load %arg4[%c0_7, %c0_8] : memref<8x128xbf16, #tpu.memory_space<vmem>>, vector<8x128xbf16>
    tpu.vector_store %arg4[%c0_7, %c0_8], %22 {strides = array<i32>} : memref<8x128xbf16, #tpu.memory_space<vmem>>, vector<8x128xbf16>,
    return
  }
  func.func @transform_0(%arg0: i32) -> (i32, i32) {
    %c0_i32 = arith.constant 0 : i32
    %c0_i32_0 = arith.constant 0 : i32
    return %arg0, %c0_i32 : i32, i32
  }
  func.func @transform_1(%arg0: i32) -> (i32, i32) {
    %c0_i32 = arith.constant 0 : i32
    %c0_i32_0 = arith.constant 0 : i32
    %c0_i32_1 = arith.constant 0 : i32
    return %c0_i32, %c0_i32_0 : i32, i32
  }
  func.func @transform_2(%arg0: i32) -> (i32, i32) {
    %c0_i32 = arith.constant 0 : i32
    %c0_i32_0 = arith.constant 0 : i32
    %c0_i32_1 = arith.constant 0 : i32
    return %c0_i32, %c0_i32_0 : i32, i32
  }
  func.func @transform_3(%arg0: i32) -> (i32, i32) {
    %c0_i32 = arith.constant 0 : i32
    %c0_i32_0 = arith.constant 0 : i32
    return %arg0, %c0_i32 : i32, i32
  }
}

</mosaic_0001>

<bundles_post_ra>
// kernel: tpu_custom_call.1
= control target key start
LH: loop header
LB: loop body
LE: loop exit
PB: predicated region body
PF: predicated region fallthrough
CT: control target
= control target key end

     0   :  { %8 = vsyncpa [#allocation3], 0  ;;  %s793_s0 = inlined_call_operand.hbm [shape: f32[16,32], index: 0, kind: input, shape index: {}]   ;;  %s794_s1 = inlined_call_operand.hbm [shape: bf16[32,128], index: 1, kind: input, shape index: {}]   ;;  %s795_s2 = inlined_call_operand.vmem [shape: f32[1,128], index: 2, kind: input, shape index: {}]   ;;  %s796_s3 = inlined_call_operand.hbm [shape: bf16[16,128], index: 3, kind: output, shape index: {}]  }
   0x1   :  { %10 = vsyncpa [#allocation3 + $0x1], 0 }
   0x2   :  { %11 = vsyncpa [#allocation6], 0 }
   0x3   :  { %12 = vsyncpa [#allocation4], 0 }
   0x4   :  { %14 = vsyncpa [#allocation4 + $0x1], 0  ;;  %s635_s12 = smov 0   ;;  %s637_s13 = smov 0  }
   0x5   :  { %s639_s14 = smov 0   ;;  %s641_s15 = smov 0  }
   0x6 LB: > { %s656_s16 = sadd.s32 4294967295, %s606_s15   ;;  %s388_s17 = sadd.s32 4294967294, %s606_s15   ;;  %s606_s15 = sphi %s641_s15, %s818_s15   ;;  %s602_s14 = sphi %s639_s14, %s817_s14   ;;  %s598_s13 = sphi %s637_s13, %s816_s13   ;;  %s594_s12 = sphi %s635_s12, %s815_s12  }
   0x7   : > { %p40_p0 = scmp.ne.s32.totalorder %s598_s13, %s594_s12  ;;  %p797_p1 = scmp.eq.s32.totalorder %s656_s16, 0 }
   0x8   : > { %p112_p3 = scmp.eq.s32.totalorder %s388_s17, 1  ;;  %p389_p5 = scmp.ge.s32.totalorder %s606_s15, 1 }
   0x9   : > { %p665_p4 = por %p797_p1, %p40_p0  ;;  %p119_p7 = scmp.lt.s32.totalorder %s606_s15, 3 }
   0xa   : > { %p670_p6 = por %p112_p3, %p40_p0  ;;  %s608_s21 = smov [#allocation5]  }
   0xb   : > { %s801_s18 = scalar_select %p665_p4, 1, 0 }
   0xc   : > { %s802_s19 = scalar_select %p670_p6, 1, 0 }
   0xd   : > { %p675_p8 = pnand %p389_p5, %p119_p7  ;;  %s131_s22 = sshll.u32 %s608_s21, 4  ;;  %s132_s22 = int_to_ptr.vmem [resolvable:$true] %s131_s22 }
   0xe   : > { %s689_s24 = sadd.s32 1, %s606_s15   ;;  %s27_s25 = sadd.s32 1, %s602_s14 }
   0xf   : > { %s803_s20 = scalar_select %p675_p8, 1, 0 }
  0x10   : > { %p425_p9 = pneg %p675_p8  ;;  %s24_s26 = ssub.s32 %s606_s15, %s689_s24 }
  0x11   : > { %s495_s27 = scalar_lea.vmem %s132_s22, 256  ;;  %p503_p5 = scmp.lt.s32.totalorder %s132_s22, %s132_s22 }
  0x12   : > { %p684_p11 = pnand %p425_p9, %p797_p1  ;;  %p496_p13 = scmp.ne.s32.totalorder %s132_s22, %s495_s27 }
  0x13   : > { %p504_p7 = scmp.lt.s32.totalorder %s495_s27, %s495_s27 }
  0x14   : > { %p486_p12 = pneg %p684_p11 }
  0x15   : > { %p505_p10 = por %p504_p7, %p503_p5 }
  0x16   : > { %p498_p0 = pnand %p496_p13, %p486_p12 }
  0x18   : > { %p499_p3 = pneg %p498_p0 }
  0x1a   : > { %p506_p2 = pnand %p505_p10, %p499_p3 }
  0x1c   : > { %509 = shalt.err (!%p506_p2)
}
  0x1d   : > { %s609_s28 = smov 64   ;;  %s610_s29 = smov 4  }
  0x1e   : > { %428 = dma.hbm_to_vmem [thread:$0]  (!%p684_p11), %s794_s1, 256, %s132_s22, [#allocation6], %s609_s28, %s609_s28, %s610_s29  }
  0x1f   : > { %p25_p9 = scmp.eq.s32.totalorder %s24_s26, 0  ;;  %p34_p12 = scmp.ne.s32.totalorder %s602_s14, %s598_s13 }
  0x20   : > { %p35_p10 = scmp.eq.s32.totalorder %s606_s15, 0  ;;  %p438_p2 = scmp.lt.s32.totalorder %s606_s15, 2 }
  0x21   : > { %s706_s5 = scalar_select %p25_p9, %s602_s14, %s27_s25  }
  0x22   : > { %p36_p13 = por %p35_p10, %p34_p12  ;;  %p805_p0 = scmp.eq.s32.totalorder %s656_s16, 1 }
  0x23   : > { %s148_s7 = sand.u32 1, %s602_s14   ;;  %s393_s8 = sshll.u32 %s606_s15, 7 }
  0x24   : > { %p710_p3 = por %p805_p0, %p34_p12  ;;  %s392_s9 = sshll.u32 %s148_s7, 3 }
  0x25   : > { %s719_s17 = scalar_lea.hbm %s793_s0, %s393_s8  ;;  %s152_s21 = scalar_lea.vmem [#allocation2], %s392_s9 }
  0x26   : > { %s806_s6 = scalar_select %p710_p3, 1, 0 }
  0x27   : > { %s159_s22 = sshll.u32 %s152_s21, 4  ;;  %p721_p11 = pnand %p438_p2, %p36_p13  ;;  %s160_s22 = int_to_ptr.vmem [resolvable:$true] %s159_s22 }
  0x28   : > { %s149_s25 = scalar_lea.sflag [#allocation3], %s148_s7  ;;  %s510_s26 = scalar_lea.hbm %s719_s17, 128 }
  0x29   : > { %p511_p5 = scmp.ne.s32.totalorder %s719_s17, %s510_s26  ;;  %p512_p7 = pneg %p721_p11 }
  0x2a   : > { %s515_s29 = scalar_lea.hbm %s793_s0, 256  ;;  %p516_p10 = scmp.lt.s32.totalorder %s719_s17, %s793_s0 }
  0x2b   : > { %p513_p9 = pnand %p512_p7, %p511_p5  ;;  %p517_p2 = scmp.lt.s32.totalorder %s515_s29, %s510_s26 }
  0x2d   : > { %p514_p12 = pneg %p513_p9  ;;  %p518_p13 = por %p517_p2, %p516_p10 }
  0x2f   : > { %p519_p0 = pnand %p518_p13, %p514_p12 }
  0x31   : > { %522 = shalt.err (!%p519_p0)
}
  0x32   : > { %s523_s8 = scalar_lea.vmem %s160_s22, 128  ;;  %s611_s7 = smov [#allocation2]  }
  0x33   : > { %p524_p1 = scmp.ne.s32.totalorder %s160_s22, %s523_s8  ;;  %s528_s9 = sshll.u32 %s611_s7, 4  ;;  %s529_s9 = int_to_ptr.vmem [resolvable:$false] %s528_s9 }
  0x34   : > { %s530_s10 = scalar_lea.vmem %s529_s9, 256  ;;  %p531_p5 = scmp.lt.s32.totalorder %s160_s22, %s529_s9 }
  0x35   : > { %p526_p6 = pnand %p524_p1, %p512_p7  ;;  %p532_p9 = scmp.lt.s32.totalorder %s530_s10, %s523_s8 }
  0x37   : > { %p527_p3 = pneg %p526_p6  ;;  %p533_p4 = por %p532_p9, %p531_p5 }
  0x39   : > { %p534_p8 = pnand %p533_p4, %p527_p3 }
  0x3b   : > { %537 = shalt.err (!%p534_p8)
}
  0x3c   : > { %432 = dma.hbm_to_vmem [thread:$0]  (!%p721_p11), %s719_s17, 128, %s160_s22, %s149_s25  }
  0x3d   : > { %p808_p12 = scmp.ne.s32.totalorder %s803_s20, 0 }
  0x3e   : > { %s742_s11 = sand.u32 (!%p808_p12), 1, %s598_s13   ;;  %p809_p1 = scmp.ne.s32.totalorder (!%p808_p12), %s801_s18, 0 }
  0x3f   : > { %168 = sbr.rel (%p808_p12) target bundleno = 333 (0x14d), region = 32  ;;  %s395_s21 = sshll.u32 (!%p808_p12), %s742_s11, 3 }
  0x40   : > { %s171_s26 = scalar_lea.sflag (!%p808_p12), [#allocation3], %s742_s11  ;;  %s174_s27 = scalar_lea.vmem (!%p808_p12), [#allocation2], %s395_s21 }
  0x44   : > { %581 = dma.done.wait (%p809_p1), %s171_s26, 128  }
  0x45   : > { %583 = vsyncadd (%p809_p1), %s171_s26, 4294967168  ;;  %p810_p4 = scmp.eq.s32.totalorder %s656_s16, 0 }
  0x47   : > { %585 = dma.done.wait (%p810_p4), [#allocation6], 256   ;;  %p811_p6 = pmov %p810_p4 }
  0x48   : > { %v612_v0 = vmov 0.0   ;;  %vm613_vm0 = vmmov 0   ;;  %v478_v1 = vld [vmem:[#allocation5 + $0x8] sm:$0xff]   ;;  %v479_v2 = vld [vmem:[#allocation5] sm:$0xff]   ;;  %v202_v3 = vld [vmem:[%s174_s27] sm:$0xff]  ;;  %vm227_vm1 = vcmask 261120   ;;  %v286_v16 = vlaneseq }
  0x49   : > { %587 = vsyncadd (%p811_p6), [#allocation6], 4294967040  ;;  %409 = vmatprep.subr.bf16.mxu0 %v612_v0  ;;  %413 = vmatprep.mubr.msk.bf16.mxu0 %vm613_vm0, %v612_v0  ;;  %v203_v4 = vpack.c.bf16 %v202_v3, %v202_v3  ;;  %v398_v5 = vld [vmem:[%s795_s2] ss:$0 sm:$0xff]  ;;  %s397_s17 = sshll.u32 %s742_s11, 2  ;;  %s403_s22 = sshll.u32 %s656_s16, 6 }
  0x4a   : > { %410 = vmatpush3.bf16.msra.mxu0 %v478_v1  ;;  %v287_v18 = vand.u32 127, %v286_v16  ;;  %s200_s23 = scalar_lea.vmem [#allocation7], %s397_s17  ;;  %s306_s30 = scalar_lea.hbm %s796_s3, %s403_s22 }
  0x4b   : > { %411 = vmatprep.subr.bf16.mxu0 %v612_v0  ;;  %s308_s25 = sshll.u32 %s200_s23, 4  ;;  %s295_s4 = scalar_lea.sflag [#allocation4], %s742_s11  ;;  %s309_s25 = int_to_ptr.vmem [resolvable:$true] %s308_s25 }
  0x4c   : > { %vm288_vm2 = vcmp.ge.s32.totalorder %v287_v18, 3  ;;  %vm289_vm3 = vcmp.lt.s32.totalorder %v287_v18, 9  ;;  %s538_s8 = scalar_lea.vmem %s309_s25, 64  ;;  %p812_p3 = scmp.ne.s32.totalorder %s806_s6, 0 }
  0x4d   : > { %vm290_vm5 = vmand %vm288_vm2, %vm289_vm3  ;;  %p539_p8 = scmp.ne.s32.totalorder %s309_s25, %s538_s8  ;;  %s614_s7 = smov [#allocation7]  }
  0x4e   : > { %412 = vmatpush3.bf16.msra.mxu0 %v479_v2  ;;  %s542_s9 = sshll.u32 %s614_s7, 4  ;;  %s543_s9 = int_to_ptr.vmem [resolvable:$false] %s542_s9 }
  0x4f   : > { %p540_p11 = pnand %p539_p8, %p812_p3  ;;  %s544_s16 = scalar_lea.vmem %s543_s9, 128 }
  0x50   : > { %p545_p10 = scmp.lt.s32.totalorder %s309_s25, %s543_s9  ;;  %p546_p2 = scmp.lt.s32.totalorder %s544_s16, %s538_s8 }
  0x51   : > { %414 = vmatmul.mubr.msk.bf16.vlgmr.msra.gmra.mxu0 %vm227_vm1, %v203_v4  ;;  %p541_p7 = pneg %p540_p11 }
  0x52   : > { %p547_p13 = por %p546_p2, %p545_p10 }
  0x54   : > { %p548_p0 = pnand %p547_p13, %p541_p7 }
 0x111   : > { %v265_v6 = vpop.f32.mrf.mxu0 }
 0x112   : > { %v266_v7 = vadd.f32 %v398_v5, %v265_v6 }
 0x113   : > { %v415_v8 = vpop.f32.mrf.mxu0 }
 0x114   : > { %v272_v9 = vand.u32 2147483647, %v266_v7  ;;  %v271_v24 = vmax.f32 %v266_v7, 0.0 }
 0x115   : > { %v268_v10 = vpop.f32.mrf.mxu0 }
 0x116   : > { %v273_v11 = vsub.f32 0.0, %v272_v9 }
 0x117   : > { %v416_v12 = vpop.f32.mrf.mxu0 }
 0x118   : > { %v274_v13 = vmul.f32 1.442695, %v273_v11 }
 0x11a   : > { %480 = vpow2.f32 %v274_v13 }
 0x127   : > { %v481_v14 = vpop.eup %480 }
 0x128   : > { %v276_v15 = vadd.f32 1.0, %v481_v14  ;;  %v279_v17 = vmul.f32 -0.5, %v481_v14  ;;  %v282_v20 = vand.u32 2147483647, %v481_v14 }
 0x12a   : > { %482 = vlog2.f32 %v276_v15  ;;  %v280_v19 = vadd.f32 1.0, %v279_v17  ;;  %vm283_vm4 = vcmp.lt.f32.partialorder %v282_v20, 0.0004427343 }
 0x12c   : > { %v281_v23 = vmul.f32 %v481_v14, %v280_v19 }
 0x137   : > { %v483_v21 = vpop.eup %482 }
 0x138   : > { %v278_v22 = vmul.f32 0.6931472, %v483_v21 }
 0x13a   : > { %v284_v25 = vsel %vm283_vm4, %v281_v23, %v278_v22 }
 0x13b   : > { %v285_v26 = vadd.f32 %v284_v25, %v271_v24 }
 0x13d   : > { %v291_v27 = vsel %vm290_vm5, %v285_v26, %v266_v7 }
 0x13e   : > { %v292_v28 = vpack.c.bf16 %v291_v27, %v291_v27 }
 0x140   : > { %293 = vst [vmem:[%s200_s23] sm:$0xf] %v292_v28 }
 0x141   : > { %551 = shalt.err (!%p548_p0)
}
 0x142   : > { %s552_s10 = scalar_lea.hbm %s306_s30, 64  ;;  %s556_s26 = scalar_lea.hbm %s796_s3, 128 }
 0x143   : > { %p553_p5 = scmp.ne.s32.totalorder %s306_s30, %s552_s10  ;;  %p557_p1 = scmp.lt.s32.totalorder %s306_s30, %s796_s3 }
 0x144   : > { %p558_p4 = scmp.lt.s32.totalorder %s556_s26, %s552_s10 }
 0x145   : > { %p554_p9 = pnand %p553_p5, %p812_p3 }
 0x146   : > { %p559_p6 = por %p558_p4, %p557_p1 }
 0x147   : > { %p555_p12 = pneg %p554_p9 }
 0x149   : > { %p560_p8 = pnand %p559_p6, %p555_p12 }
 0x14b   : > { %563 = shalt.err (!%p560_p8)
}
 0x14c   : > { %423 = dma.vmem_to_hbm [thread:$0]  (%p812_p3), %s309_s25, 64, %s306_s30, %s295_s4  }
 0x14d PF: > { %s320_s20 = sand.u32 1, %s594_s12   ;;  %p813_p11 = scmp.ne.s32.totalorder %s802_s19, 0 }
 0x14e   : > { %p814_p7 = scmp.ge.s32.totalorder %s606_s15, 2  ;;  %s321_s17 = scalar_lea.sflag [#allocation4], %s320_s20 }
 0x150   : > { %p434_p10 = pnand %p814_p7, %p813_p11 }
 0x152   : > { %p435_p2 = pneg %p434_p10 }
 0x154   : > { %589 = dma.done.wait (%p435_p2), %s321_s17, 64  }
 0x155   : > { %591 = vsyncadd (%p435_p2), %s321_s17, 4294967232  ;;  %p17_p13 = scmp.ge.s32.totalorder %s689_s24, 4   ;;  %s815_s12 = smov %s598_s13 }
 0x156   : > { %s816_s13 = smov %s602_s14  ;;  %s817_s14 = smov %s706_s5 }
 0x157   : > { %s818_s15 = smov %s689_s24  ;;  %19 = sbr.rel (!%p17_p13) target bundleno = 6 (0x6), region = 81 }
 0x15c   :  { %326 = vsyncpa [#allocation3], 1 }
 0x15d   :  { %328 = vsyncpa [#allocation3 + $0x1], 1 }
 0x15e   :  { %329 = vsyncpa [#allocation6], 1 }
 0x15f   :  { %330 = vsyncpa [#allocation4], 1 }
 0x160   :  { %332 = vsyncpa [#allocation4 + $0x1], 1 }

// kernel: tpu_custom_call.1
= control target key start
LH: loop header
LB: loop body
LE: loop exit
PB: predicated region body
PF: predicated region fallthrough
CT: control target
= control target key end

     0   :  { %8 = vsyncpa [#allocation3], 0  ;;  %s793_s0 = inlined_call_operand.hbm [shape: f32[16,32], index: 0, kind: input, shape index: {}]   ;;  %s794_s1 = inlined_call_operand.hbm [shape: bf16[32,128], index: 1, kind: input, shape index: {}]   ;;  %s795_s2 = inlined_call_operand.vmem [shape: f32[1,128], index: 2, kind: input, shape index: {}]   ;;  %s796_s3 = inlined_call_operand.hbm [shape: bf16[16,128], index: 3, kind: output, shape index: {}]  }
   0x1   :  { %10 = vsyncpa [#allocation3 + $0x1], 0 }
   0x2   :  { %11 = vsyncpa [#allocation6], 0 }
   0x3   :  { %12 = vsyncpa [#allocation4], 0 }
   0x4   :  { %14 = vsyncpa [#allocation4 + $0x1], 0  ;;  %s635_s12 = smov 0   ;;  %s637_s13 = smov 0  }
   0x5   :  { %s639_s14 = smov 0   ;;  %s641_s15 = smov 0  }
   0x6 LB: > { %s656_s16 = sadd.s32 4294967295, %s606_s15   ;;  %s388_s17 = sadd.s32 4294967294, %s606_s15   ;;  %s606_s15 = sphi %s641_s15, %s818_s15   ;;  %s602_s14 = sphi %s639_s14, %s817_s14   ;;  %s598_s13 = sphi %s637_s13, %s816_s13   ;;  %s594_s12 = sphi %s635_s12, %s815_s12  }
   0x7   : > { %p40_p0 = scmp.ne.s32.totalorder %s598_s13, %s594_s12  ;;  %p797_p1 = scmp.eq.s32.totalorder %s656_s16, 0 }
   0x8   : > { %p112_p3 = scmp.eq.s32.totalorder %s388_s17, 1  ;;  %p389_p5 = scmp.ge.s32.totalorder %s606_s15, 1 }
   0x9   : > { %p665_p4 = por %p797_p1, %p40_p0  ;;  %p119_p7 = scmp.lt.s32.totalorder %s606_s15, 3 }
   0xa   : > { %p670_p6 = por %p112_p3, %p40_p0  ;;  %s608_s21 = smov [#allocation5]  }
   0xb   : > { %s801_s18 = scalar_select %p665_p4, 1, 0 }
   0xc   : > { %s802_s19 = scalar_select %p670_p6, 1, 0 }
   0xd   : > { %p675_p8 = pnand %p389_p5, %p119_p7  ;;  %s131_s22 = sshll.u32 %s608_s21, 4  ;;  %s132_s22 = int_to_ptr.vmem [resolvable:$true] %s131_s22 }
   0xe   : > { %s689_s24 = sadd.s32 1, %s606_s15   ;;  %s27_s25 = sadd.s32 1, %s602_s14 }
   0xf   : > { %s803_s20 = scalar_select %p675_p8, 1, 0 }
  0x10   : > { %p425_p9 = pneg %p675_p8  ;;  %s24_s26 = ssub.s32 %s606_s15, %s689_s24 }
  0x11   : > { %s495_s27 = scalar_lea.vmem %s132_s22, 256  ;;  %p503_p5 = scmp.lt.s32.totalorder %s132_s22, %s132_s22 }
  0x12   : > { %p684_p11 = pnand %p425_p9, %p797_p1  ;;  %p496_p13 = scmp.ne.s32.totalorder %s132_s22, %s495_s27 }
  0x13   : > { %p504_p7 = scmp.lt.s32.totalorder %s495_s27, %s495_s27 }
  0x14   : > { %p486_p12 = pneg %p684_p11 }
  0x15   : > { %p505_p10 = por %p504_p7, %p503_p5 }
  0x16   : > { %p498_p0 = pnand %p496_p13, %p486_p12 }
  0x18   : > { %p499_p3 = pneg %p498_p0 }
  0x1a   : > { %p506_p2 = pnand %p505_p10, %p499_p3 }
  0x1c   : > { %509 = shalt.err (!%p506_p2)
}
  0x1d   : > { %s609_s28 = smov 64   ;;  %s610_s29 = smov 4  }
  0x1e   : > { %428 = dma.hbm_to_vmem [thread:$0]  (!%p684_p11), %s794_s1, 256, %s132_s22, [#allocation6], %s609_s28, %s609_s28, %s610_s29  }
  0x1f   : > { %p25_p9 = scmp.eq.s32.totalorder %s24_s26, 0  ;;  %p34_p12 = scmp.ne.s32.totalorder %s602_s14, %s598_s13 }
  0x20   : > { %p35_p10 = scmp.eq.s32.totalorder %s606_s15, 0  ;;  %p438_p2 = scmp.lt.s32.totalorder %s606_s15, 2 }
  0x21   : > { %s706_s5 = scalar_select %p25_p9, %s602_s14, %s27_s25  }
  0x22   : > { %p36_p13 = por %p35_p10, %p34_p12  ;;  %p805_p0 = scmp.eq.s32.totalorder %s656_s16, 1 }
  0x23   : > { %s148_s7 = sand.u32 1, %s602_s14   ;;  %s393_s8 = sshll.u32 %s606_s15, 7 }
  0x24   : > { %p710_p3 = por %p805_p0, %p34_p12  ;;  %s392_s9 = sshll.u32 %s148_s7, 3 }
  0x25   : > { %s719_s17 = scalar_lea.hbm %s793_s0, %s393_s8  ;;  %s152_s21 = scalar_lea.vmem [#allocation2], %s392_s9 }
  0x26   : > { %s806_s6 = scalar_select %p710_p3, 1, 0 }
  0x27   : > { %s159_s22 = sshll.u32 %s152_s21, 4  ;;  %p721_p11 = pnand %p438_p2, %p36_p13  ;;  %s160_s22 = int_to_ptr.vmem [resolvable:$true] %s159_s22 }
  0x28   : > { %s149_s25 = scalar_lea.sflag [#allocation3], %s148_s7  ;;  %s510_s26 = scalar_lea.hbm %s719_s17, 128 }
  0x29   : > { %p511_p5 = scmp.ne.s32.totalorder %s719_s17, %s510_s26  ;;  %p512_p7 = pneg %p721_p11 }
  0x2a   : > { %s515_s29 = scalar_lea.hbm %s793_s0, 256  ;;  %p516_p10 = scmp.lt.s32.totalorder %s719_s17, %s793_s0 }
  0x2b   : > { %p513_p9 = pnand %p512_p7, %p511_p5  ;;  %p517_p2 = scmp.lt.s32.totalorder %s515_s29, %s510_s26 }
  0x2d   : > { %p514_p12 = pneg %p513_p9  ;;  %p518_p13 = por %p517_p2, %p516_p10 }
  0x2f   : > { %p519_p0 = pnand %p518_p13, %p514_p12 }
  0x31   : > { %522 = shalt.err (!%p519_p0)
}
  0x32   : > { %s523_s8 = scalar_lea.vmem %s160_s22, 128  ;;  %s611_s7 = smov [#allocation2]  }
  0x33   : > { %p524_p1 = scmp.ne.s32.totalorder %s160_s22, %s523_s8  ;;  %s528_s9 = sshll.u32 %s611_s7, 4  ;;  %s529_s9 = int_to_ptr.vmem [resolvable:$false] %s528_s9 }
  0x34   : > { %s530_s10 = scalar_lea.vmem %s529_s9, 256  ;;  %p531_p5 = scmp.lt.s32.totalorder %s160_s22, %s529_s9 }
  0x35   : > { %p526_p6 = pnand %p524_p1, %p512_p7  ;;  %p532_p9 = scmp.lt.s32.totalorder %s530_s10, %s523_s8 }
  0x37   : > { %p527_p3 = pneg %p526_p6  ;;  %p533_p4 = por %p532_p9, %p531_p5 }
  0x39   : > { %p534_p8 = pnand %p533_p4, %p527_p3 }
  0x3b   : > { %537 = shalt.err (!%p534_p8)
}
  0x3c   : > { %432 = dma.hbm_to_vmem [thread:$0]  (!%p721_p11), %s719_s17, 128, %s160_s22, %s149_s25  }
  0x3d   : > { %p808_p12 = scmp.ne.s32.totalorder %s803_s20, 0 }
  0x3e   : > { %s742_s11 = sand.u32 (!%p808_p12), 1, %s598_s13   ;;  %p809_p1 = scmp.ne.s32.totalorder (!%p808_p12), %s801_s18, 0 }
  0x3f   : > { %168 = sbr.rel (%p808_p12) target bundleno = 333 (0x14d), region = 32  ;;  %s395_s21 = sshll.u32 (!%p808_p12), %s742_s11, 3 }
  0x40   : > { %s171_s26 = scalar_lea.sflag (!%p808_p12), [#allocation3], %s742_s11  ;;  %s174_s27 = scalar_lea.vmem (!%p808_p12), [#allocation2], %s395_s21 }
  0x44   : > { %581 = dma.done.wait (%p809_p1), %s171_s26, 128  }
  0x45   : > { %583 = vsyncadd (%p809_p1), %s171_s26, 4294967168  ;;  %p810_p4 = scmp.eq.s32.totalorder %s656_s16, 0 }
  0x47   : > { %585 = dma.done.wait (%p810_p4), [#allocation6], 256   ;;  %p811_p6 = pmov %p810_p4 }
  0x48   : > { %v612_v0 = vmov 0.0   ;;  %vm613_vm0 = vmmov 0   ;;  %v478_v1 = vld [vmem:[#allocation5 + $0x8] sm:$0xff]   ;;  %v479_v2 = vld [vmem:[#allocation5] sm:$0xff]   ;;  %v202_v3 = vld [vmem:[%s174_s27] sm:$0xff]  ;;  %vm227_vm1 = vcmask 261120   ;;  %v286_v16 = vlaneseq }
  0x49   : > { %587 = vsyncadd (%p811_p6), [#allocation6], 4294967040  ;;  %409 = vmatprep.subr.bf16.mxu0 %v612_v0  ;;  %413 = vmatprep.mubr.msk.bf16.mxu0 %vm613_vm0, %v612_v0  ;;  %v203_v4 = vpack.c.bf16 %v202_v3, %v202_v3  ;;  %v398_v5 = vld [vmem:[%s795_s2] ss:$0 sm:$0xff]  ;;  %s397_s17 = sshll.u32 %s742_s11, 2  ;;  %s403_s22 = sshll.u32 %s656_s16, 6 }
  0x4a   : > { %410 = vmatpush3.bf16.msra.mxu0 %v478_v1  ;;  %v287_v18 = vand.u32 127, %v286_v16  ;;  %s200_s23 = scalar_lea.vmem [#allocation7], %s397_s17  ;;  %s306_s30 = scalar_lea.hbm %s796_s3, %s403_s22 }
  0x4b   : > { %411 = vmatprep.subr.bf16.mxu0 %v612_v0  ;;  %s308_s25 = sshll.u32 %s200_s23, 4  ;;  %s295_s4 = scalar_lea.sflag [#allocation4], %s742_s11  ;;  %s309_s25 = int_to_ptr.vmem [resolvable:$true] %s308_s25 }
  0x4c   : > { %vm288_vm2 = vcmp.ge.s32.totalorder %v287_v18, 3  ;;  %vm289_vm3 = vcmp.lt.s32.totalorder %v287_v18, 9  ;;  %s538_s8 = scalar_lea.vmem %s309_s25, 64  ;;  %p812_p3 = scmp.ne.s32.totalorder %s806_s6, 0 }
  0x4d   : > { %vm290_vm5 = vmand %vm288_vm2, %vm289_vm3  ;;  %p539_p8 = scmp.ne.s32.totalorder %s309_s25, %s538_s8  ;;  %s614_s7 = smov [#allocation7]  }
  0x4e   : > { %412 = vmatpush3.bf16.msra.mxu0 %v479_v2  ;;  %s542_s9 = sshll.u32 %s614_s7, 4  ;;  %s543_s9 = int_to_ptr.vmem [resolvable:$false] %s542_s9 }
  0x4f   : > { %p540_p11 = pnand %p539_p8, %p812_p3  ;;  %s544_s16 = scalar_lea.vmem %s543_s9, 128 }
  0x50   : > { %p545_p10 = scmp.lt.s32.totalorder %s309_s25, %s543_s9  ;;  %p546_p2 = scmp.lt.s32.totalorder %s544_s16, %s538_s8 }
  0x51   : > { %414 = vmatmul.mubr.msk.bf16.vlgmr.msra.gmra.mxu0 %vm227_vm1, %v203_v4  ;;  %p541_p7 = pneg %p540_p11 }
  0x52   : > { %p547_p13 = por %p546_p2, %p545_p10 }
  0x54   : > { %p548_p0 = pnand %p547_p13, %p541_p7 }
 0x111   : > { %v265_v6 = vpop.f32.mrf.mxu0 }
 0x112   : > { %v266_v7 = vadd.f32 %v398_v5, %v265_v6 }
 0x113   : > { %v415_v8 = vpop.f32.mrf.mxu0 }
 0x114   : > { %v272_v9 = vand.u32 2147483647, %v266_v7  ;;  %v271_v24 = vmax.f32 %v266_v7, 0.0 }
 0x115   : > { %v268_v10 = vpop.f32.mrf.mxu0 }
 0x116   : > { %v273_v11 = vsub.f32 0.0, %v272_v9 }
 0x117   : > { %v416_v12 = vpop.f32.mrf.mxu0 }
 0x118   : > { %v274_v13 = vmul.f32 1.442695, %v273_v11 }
 0x11a   : > { %480 = vpow2.f32 %v274_v13 }
 0x127   : > { %v481_v14 = vpop.eup %480 }
 0x128   : > { %v276_v15 = vadd.f32 1.0, %v481_v14  ;;  %v279_v17 = vmul.f32 -0.5, %v481_v14  ;;  %v282_v20 = vand.u32 2147483647, %v481_v14 }
 0x12a   : > { %482 = vlog2.f32 %v276_v15  ;;  %v280_v19 = vadd.f32 1.0, %v279_v17  ;;  %vm283_vm4 = vcmp.lt.f32.partialorder %v282_v20, 0.0004427343 }
 0x12c   : > { %v281_v23 = vmul.f32 %v481_v14, %v280_v19 }
 0x137   : > { %v483_v21 = vpop.eup %482 }
 0x138   : > { %v278_v22 = vmul.f32 0.6931472, %v483_v21 }
 0x13a   : > { %v284_v25 = vsel %vm283_vm4, %v281_v23, %v278_v22 }
 0x13b   : > { %v285_v26 = vadd.f32 %v284_v25, %v271_v24 }
 0x13d   : > { %v291_v27 = vsel %vm290_vm5, %v285_v26, %v266_v7 }
 0x13e   : > { %v292_v28 = vpack.c.bf16 %v291_v27, %v291_v27 }
 0x140   : > { %293 = vst [vmem:[%s200_s23] sm:$0xf] %v292_v28 }
 0x141   : > { %551 = shalt.err (!%p548_p0)
}
 0x142   : > { %s552_s10 = scalar_lea.hbm %s306_s30, 64  ;;  %s556_s26 = scalar_lea.hbm %s796_s3, 128 }
 0x143   : > { %p553_p5 = scmp.ne.s32.totalorder %s306_s30, %s552_s10  ;;  %p557_p1 = scmp.lt.s32.totalorder %s306_s30, %s796_s3 }
 0x144   : > { %p558_p4 = scmp.lt.s32.totalorder %s556_s26, %s552_s10 }
 0x145   : > { %p554_p9 = pnand %p553_p5, %p812_p3 }
 0x146   : > { %p559_p6 = por %p558_p4, %p557_p1 }
 0x147   : > { %p555_p12 = pneg %p554_p9 }
 0x149   : > { %p560_p8 = pnand %p559_p6, %p555_p12 }
 0x14b   : > { %563 = shalt.err (!%p560_p8)
}
 0x14c   : > { %423 = dma.vmem_to_hbm [thread:$0]  (%p812_p3), %s309_s25, 64, %s306_s30, %s295_s4  }
 0x14d PF: > { %s320_s20 = sand.u32 1, %s594_s12   ;;  %p813_p11 = scmp.ne.s32.totalorder %s802_s19, 0 }
 0x14e   : > { %p814_p7 = scmp.ge.s32.totalorder %s606_s15, 2  ;;  %s321_s17 = scalar_lea.sflag [#allocation4], %s320_s20 }
 0x150   : > { %p434_p10 = pnand %p814_p7, %p813_p11 }
 0x152   : > { %p435_p2 = pneg %p434_p10 }
 0x154   : > { %589 = dma.done.wait (%p435_p2), %s321_s17, 64  }
 0x155   : > { %591 = vsyncadd (%p435_p2), %s321_s17, 4294967232  ;;  %p17_p13 = scmp.ge.s32.totalorder %s689_s24, 4   ;;  %s815_s12 = smov %s598_s13 }
 0x156   : > { %s816_s13 = smov %s602_s14  ;;  %s817_s14 = smov %s706_s5 }
 0x157   : > { %s818_s15 = smov %s689_s24  ;;  %19 = sbr.rel (!%p17_p13) target bundleno = 6 (0x6), region = 81 }
 0x15c   :  { %326 = vsyncpa [#allocation3], 1 }
 0x15d   :  { %328 = vsyncpa [#allocation3 + $0x1], 1 }
 0x15e   :  { %329 = vsyncpa [#allocation6], 1 }
 0x15f   :  { %330 = vsyncpa [#allocation4], 1 }
 0x160   :  { %332 = vsyncpa [#allocation4 + $0x1], 1 }

</bundles_post_ra>
